<compile_context>
chip_gen: v5e
topology: v5e:2x2
jax: 0.10.0
libtpu: 0.0.40
codegen_flags: <defaults>
</compile_context>

<pallas_src>
import functools
import math

import jax
import jax.numpy as jnp
from jax import lax
from jax.experimental import pallas as pl
from jax.experimental.pallas import tpu as pltpu


def _mca_kernel(x_ref, wqkv_ref, bqkv_ref, wp_ref, bp_ref, amask_ref, hmask_ref,
                o_ref, qkv_scr, *, n_heads, group_rows):
    """Fused masked causal attention for a block of batch elements.

    x_ref     : (Bb, T, C)   bf16 input tile
    wqkv_ref  : (C, 3C)      bf16 packed [Wq*scale | Wk | Wv]   (in, out)
    bqkv_ref  : (1, 3C)      f32  packed [bq*scale | bk | bv]
    wp_ref    : (C, C)       bf16 output projection weight      (in, out)
    bp_ref    : (1, C)       f32  output projection bias
    amask_ref : (GT, GT)     f32  additive block-diagonal causal mask (0 / -1e30)
    hmask_ref : (H, C)       bf16 per-head channel-band masks
    o_ref     : (Bb, T, C)   bf16 output tile
    qkv_scr   : (Bb*T, 3C)   f32  VMEM scratch for the fused projection
    """
    Bb, T, C = x_ref.shape
    H = n_heads
    GT = group_rows                 # rows per packed attention group (G sequences * T)
    G = GT // T                     # sequences packed per group
    n_groups = (Bb * T) // GT

    # ---- fused QKV projection: one (Bb*T, C) @ (C, 3C) MXU matmul, f32 accumulation.
    x2d = x_ref[...].reshape(Bb * T, C)                       # major-dim merge (free)
    qkv = jnp.dot(x2d, wqkv_ref[...], preferred_element_type=jnp.float32)
    qkv_scr[...] = qkv + bqkv_ref[...]                        # scale already folded in

    # Loop-invariant operands (captured as fori_loop constants).
    mask_add = amask_ref[...]                                 # (GT, GT)
    band = [hmask_ref[h:h + 1, :] for h in range(H)]          # (1, C) per head
    wp = wp_ref[...]
    bp = bp_ref[...]

    def group_body(g, carry):
        r0 = pl.multiple_of(g * GT, GT)
        q_g = qkv_scr[pl.ds(r0, GT), pl.ds(0, C)].astype(jnp.bfloat16)
        k_g = qkv_scr[pl.ds(r0, GT), pl.ds(C, C)].astype(jnp.bfloat16)
        v_g = qkv_scr[pl.ds(r0, GT), pl.ds(2 * C, C)].astype(jnp.bfloat16)

        acc = jnp.zeros((GT, C), jnp.float32)
        for h in range(H):                                    # static, small head loop
            # Restrict the contraction to head h's channel band by masking K only.
            s = lax.dot_general(q_g, k_g * band[h], (((1,), (1,)), ((), ())),
                                preferred_element_type=jnp.float32)
            s = s + mask_add                                  # block-diag causal mask
            m = jnp.max(s, axis=-1, keepdims=True)
            p = jnp.exp(s - m)
            p = p * pl.reciprocal(jnp.sum(p, axis=-1, keepdims=True), approx=True)
            # P @ (V * band_h) lands head h's output in its own channel band; summing
            # over heads rebuilds (GT, C) with no concat / head relayout.
            acc = acc + jnp.dot(p.astype(jnp.bfloat16), v_g * band[h],
                                preferred_element_type=jnp.float32)

        y = jnp.dot(acc.astype(jnp.bfloat16), wp,
                    preferred_element_type=jnp.float32) + bp
        b0 = pl.multiple_of(g * G, G)
        o_ref[pl.ds(b0, G), :, :] = y.reshape(G, T, C).astype(o_ref.dtype)
        return carry

    lax.fori_loop(0, n_groups, group_body, 0)


def _vmem_capacity_bytes():
    try:
        return int(pltpu.get_tpu_info().vmem_capacity_bytes)
    except Exception:  # conservative fallback: v7x figure (smallest of v5e/v6e/v7x)
        return 64 * 1024 * 1024


def _vmem_estimate_bytes(bb, T, C):
    """Rough per-grid-step VMEM footprint of the kernel (bytes)."""
    rows = bb * T
    io_tiles = 2 * 2 * (rows * C * 2)          # bf16 x tile + bf16 out tile, 2x buffered
    qkv_scratch = rows * 3 * C * 4             # f32 fused-projection scratch
    transients = rows * 3 * C * 4 + 3 * 128 * 128 * 4 + 2 * rows * C * 4
    consts = (3 * C * C + C * C) * 2 + 4 * C * 4 + 128 * 128 * 4
    return io_tiles + qkv_scratch + transients + consts


def _pick_block_b(B, T, C, *, target_rows=1024, min_grid_steps=2):
    """Batch-block size: ~target_rows rows/step, VMEM-aware, >=2 grid steps if cheap."""
    budget = _vmem_capacity_bytes() // 4       # headroom for pipeline buffers / temps
    bb = max(1, min(B, max(1, target_rows // max(T, 1))))
    while bb > 1 and _vmem_estimate_bytes(bb, T, C) > budget:
        bb -= 1
    while B % bb:
        bb -= 1
    if B // bb < min_grid_steps:               # v7x has 2 TensorCores: prefer >= 2 steps
        cand = bb - 1
        while cand >= 1 and (B % cand != 0 or B // cand < min_grid_steps):
            cand -= 1
        if cand >= 1 and cand * T >= 64:       # ...unless steps would become tiny
            bb = cand
    return bb


def _pick_group_rows(block_b, T):
    """Sequences packed per attention group so G*T fills ~128 rows/lanes."""
    g = max(1, min(block_b, max(1, 128 // T)))
    while block_b % g:
        g -= 1
    return g * T


def masked_causal_attention(x, params, n_heads, block_b=None, out_dtype=jnp.bfloat16):
    """x: (B, T, C) f32. params: (C, C) weights stored as (in, out) and (1, C) biases."""
    B, T, C = x.shape
    assert C % n_heads == 0
    D = C // n_heads
    scale = 1.0 / math.sqrt(D)

    if block_b is None:
        block_b = _pick_block_b(B, T, C)
    assert B % block_b == 0
    grid_b = B // block_b
    GT = _pick_group_rows(block_b, T)

    # Pack q/k/v into one (C, 3C) weight / (1, 3C) bias; fold the softmax scale into the
    # q columns (free, host side).  MXU operands are bf16, biases stay f32.
    wqkv = jnp.concatenate(
        [params["wq"] * scale, params["wk"], params["wv"]], axis=1).astype(jnp.bfloat16)
    bqkv = jnp.concatenate(
        [params["bq"] * scale, params["bk"], params["bv"]], axis=1).astype(jnp.float32)
    wp = params["wp"].astype(jnp.bfloat16)
    bp = params["bp"].astype(jnp.float32)
    xb = x.astype(jnp.bfloat16)

    # Additive block-diagonal causal mask for one packed group of G = GT//T sequences.
    r = jnp.arange(GT)
    same_seq = (r[:, None] // T) == (r[None, :] // T)
    causal = r[:, None] >= r[None, :]
    amask = jnp.where(same_seq & causal, 0.0, -1e30).astype(jnp.float32)

    # Per-head channel band masks: head h owns channels [h*D, (h+1)*D).
    ch = jnp.arange(C)
    hmask = ((ch[None, :] // D) == jnp.arange(n_heads)[:, None]).astype(jnp.bfloat16)

    kernel = functools.partial(_mca_kernel, n_heads=n_heads, group_rows=GT)
    args = (xb, wqkv, bqkv, wp, bp, amask, hmask)

    def build(single_buffer_consts):
        const_kw = {"pipeline_mode": pl.Buffered(1)} if single_buffer_consts else {}
        in_specs = [
            pl.BlockSpec((block_b, T, C), lambda i: (i, 0, 0)),            # x
            pl.BlockSpec((C, 3 * C), lambda i: (0, 0), **const_kw),        # packed Wqkv
            pl.BlockSpec((1, 3 * C), lambda i: (0, 0), **const_kw),        # packed bias
            pl.BlockSpec((C, C), lambda i: (0, 0), **const_kw),            # Wproj
            pl.BlockSpec((1, C), lambda i: (0, 0), **const_kw),            # bproj
            pl.BlockSpec((GT, GT), lambda i: (0, 0), **const_kw),          # additive mask
            pl.BlockSpec((n_heads, C), lambda i: (0, 0), **const_kw),      # head bands
        ]
        return pl.pallas_call(
            kernel,
            out_shape=jax.ShapeDtypeStruct((B, T, C), out_dtype),
            grid_spec=pltpu.PrefetchScalarGridSpec(
                num_scalar_prefetch=0,
                grid=(grid_b,),
                in_specs=in_specs,
                out_specs=pl.BlockSpec((block_b, T, C), lambda i: (i, 0, 0)),
                scratch_shapes=[pltpu.VMEM((block_b * T, 3 * C), jnp.float32)],
            ),
            compiler_params=pltpu.CompilerParams(
                dimension_semantics=("parallel",)),
        )

    try:
        return build(True)(*args)
    except Exception:
        # pipeline_mode=pl.Buffered(1) (single-buffered constant blocks) may not be
        # accepted by every Pallas version; fall back to default double buffering.
        return build(False)(*args)


def _reference(x, params, n_heads):
    """Pure-JAX f32 reference matching the PyTorch forward (eval mode)."""
    B, T, C = x.shape
    D = C // n_heads

    def lin(v, w, b):
        return v @ w + b

    q = lin(x, params["wq"], params["bq"]).reshape(B, T, n_heads, D).transpose(0, 2, 1, 3)
    k = lin(x, params["wk"], params["bk"]).reshape(B, T, n_heads, D).transpose(0, 2, 1, 3)
    v = lin(x, params["wv"], params["bv"]).reshape(B, T, n_heads, D).transpose(0, 2, 1, 3)

    w = jnp.einsum("bhqd,bhkd->bhqk", q, k) / math.sqrt(D)
    mask = jnp.tril(jnp.ones((T, T), bool))
    w = jnp.where(mask, w, -jnp.inf)
    p = jax.nn.softmax(w, axis=-1)
    att = jnp.einsum("bhqk,bhkd->bhqd", p, v).transpose(0, 2, 1, 3).reshape(B, T, C)
    return lin(att, params["wp"], params["bp"])


if __name__ == "__main__":
    def make_params(key, C):
        keys = jax.random.split(key, 8)
        s = 1.0 / math.sqrt(C)
        names = ["wq", "bq", "wk", "bk", "wv", "bv", "wp", "bp"]
        shapes = [(C, C), (1, C)] * 4
        return {n: jax.random.uniform(k, sh, jnp.float32, -s, s)
                for n, k, sh in zip(names, keys, shapes)}

    key = jax.random.PRNGKey(0)
    kp, kx_small, kx_big = jax.random.split(key, 3)

    # Small shapes consistent with the module: h_dim=32, max_T=8, n_heads=2.
    T, C, n_heads = 8, 32, 2
    params = make_params(kp, C)

    # B=2 exercises the degenerate (single small group) path; B=64 exercises multi-group
    # sequence packing (G=16, GT=128) and a multi-step grid.
    for B, kx in ((2, kx_small), (64, kx_big)):
        x = jax.random.normal(kx, (B, T, C), jnp.float32)
        out = jax.block_until_ready(masked_causal_attention(x, params, n_heads))
        ref = _reference(x, params, n_heads)
        assert out.shape == (B, T, C)
        # bf16 MXU operands / bf16 output + approx reciprocal -> loosened tolerance.
        err = jnp.max(jnp.abs(out.astype(jnp.float32) - ref))
        assert jnp.allclose(out.astype(jnp.float32), ref, atol=4e-2, rtol=4e-2), \
            f"B={B}: max abs err {err}"

    print("KERNEL_OK")
</pallas_src>

<mosaic_0001>
module attributes {stable_mosaic.version = 11 : i64} {
  func.func @_mca_kernel(%arg0: i32, %arg1: memref<2x8x32xbf16, #tpu.memory_space<vmem>>, %arg2: memref<32x96xbf16, #tpu.memory_space<vmem>>, %arg3: memref<1x96xf32, #tpu.memory_space<vmem>>, %arg4: memref<32x32xbf16, #tpu.memory_space<vmem>>, %arg5: memref<1x32xf32, #tpu.memory_space<vmem>>, %arg6: memref<16x16xf32, #tpu.memory_space<vmem>>, %arg7: memref<2x32xbf16, #tpu.memory_space<vmem>>, %arg8: memref<2x8x32xbf16, #tpu.memory_space<vmem>>, %arg9: memref<16x96xf32, #tpu.memory_space<vmem>>) attributes {dimension_semantics = [#tpu.dimension_semantics<parallel>], iteration_bounds = array<i64: 1>, scalar_prefetch = 0 : i64, scratch_operands = 1 : i64, tpu.core_type = #tpu.core_type<tc>, window_params = [{transform_indices = @transform_0, window_bounds = array<i64: 2, 8, 32>}, {pipeline_mode = #tpu.pipeline_mode<synchronous>, transform_indices = @transform_1, window_bounds = array<i64: 32, 96>}, {pipeline_mode = #tpu.pipeline_mode<synchronous>, transform_indices = @transform_2, window_bounds = array<i64: 1, 96>}, {pipeline_mode = #tpu.pipeline_mode<synchronous>, transform_indices = @transform_3, window_bounds = array<i64: 32, 32>}, {pipeline_mode = #tpu.pipeline_mode<synchronous>, transform_indices = @transform_4, window_bounds = array<i64: 1, 32>}, {pipeline_mode = #tpu.pipeline_mode<synchronous>, transform_indices = @transform_5, window_bounds = array<i64: 16, 16>}, {pipeline_mode = #tpu.pipeline_mode<synchronous>, transform_indices = @transform_6, window_bounds = array<i64: 2, 32>}, {transform_indices = @transform_7, window_bounds = array<i64: 2, 8, 32>}]} {
    %c0 = arith.constant 0 : index
    %c0_0 = arith.constant 0 : index
    %c0_1 = arith.constant 0 : index
    %0 = vector.load %arg1[%c0, %c0_0, %c0_1] : memref<2x8x32xbf16, #tpu.memory_space<vmem>>, vector<2x8x32xbf16>
    %1 = vector.shape_cast %0 : vector<2x8x32xbf16> to vector<16x32xbf16>
    %c0_2 = arith.constant 0 : index
    %c0_3 = arith.constant 0 : index
    %2 = vector.load %arg2[%c0_2, %c0_3] : memref<32x96xbf16, #tpu.memory_space<vmem>>, vector<32x96xbf16>
    %cst = arith.constant dense<0.000000e+00> : vector<16x96xf32>
    %3 = tpu.matmul %1, %2, %cst {dimension_numbers = #tpu.dot_dimension_numbers<[1], [0], [0], [1], [0, 0, 1, 1], [], []>} : vector<16x32xbf16>, vector<32x96xbf16>, vector<16x96xf32> -> vector<16x96xf32>
    %c0_4 = arith.constant 0 : index
    %c0_5 = arith.constant 0 : index
    %4 = vector.load %arg3[%c0_4, %c0_5] : memref<1x96xf32, #tpu.memory_space<vmem>>, vector<1x96xf32>
    %5 = vector.broadcast %4 : vector<1x96xf32> to vector<16x96xf32>
    %6 = arith.addf %3, %5 : vector<16x96xf32>
    %c0_6 = arith.constant 0 : index
    %c0_7 = arith.constant 0 : index
    %7 = vector.load %arg9[%c0_6, %c0_7] : memref<16x96xf32, #tpu.memory_space<vmem>>, vector<16x96xf32>
    tpu.vector_store %arg9[%c0_6, %c0_7], %6 {strides = array<i32>} : memref<16x96xf32, #tpu.memory_space<vmem>>, vector<16x96xf32>,
    %c0_8 = arith.constant 0 : index
    %c0_9 = arith.constant 0 : index
    %8 = vector.load %arg6[%c0_8, %c0_9] : memref<16x16xf32, #tpu.memory_space<vmem>>, vector<16x16xf32>
    %c0_10 = arith.constant 0 : index
    %c0_11 = arith.constant 0 : index
    %9 = vector.load %arg7[%c0_10, %c0_11] : memref<2x32xbf16, #tpu.memory_space<vmem>>, vector<1x32xbf16>
    %c1 = arith.constant 1 : index
    %c0_12 = arith.constant 0 : index
    %10 = vector.load %arg7[%c1, %c0_12] : memref<2x32xbf16, #tpu.memory_space<vmem>>, vector<1x32xbf16>
    %c0_13 = arith.constant 0 : index
    %c0_14 = arith.constant 0 : index
    %11 = vector.load %arg4[%c0_13, %c0_14] : memref<32x32xbf16, #tpu.memory_space<vmem>>, vector<32x32xbf16>
    %c0_15 = arith.constant 0 : index
    %c0_16 = arith.constant 0 : index
    %12 = vector.load %arg5[%c0_15, %c0_16] : memref<1x32xf32, #tpu.memory_space<vmem>>, vector<1x32xf32>
    %c0_i32 = arith.constant 0 : i32
    %c16_i32 = arith.constant 16 : i32
    %13 = arith.muli %c0_i32, %c16_i32 : i32
    %14 = tpu.assume_multiple %13, 16 : i32
    %15 = arith.index_cast %14 : i32 to index
    %c0_17 = arith.constant 0 : index
    %16 = vector.load %arg9[%15, %c0_17] : memref<16x96xf32, #tpu.memory_space<vmem>>, vector<16x32xf32>
    %17 = arith.truncf %16 : vector<16x32xf32> to vector<16x32xbf16>
    %18 = arith.index_cast %14 : i32 to index
    %c32 = arith.constant 32 : index
    %19 = vector.load %arg9[%18, %c32] : memref<16x96xf32, #tpu.memory_space<vmem>>, vector<16x32xf32>
    %20 = arith.truncf %19 : vector<16x32xf32> to vector<16x32xbf16>
    %21 = arith.index_cast %14 : i32 to index
    %c64 = arith.constant 64 : index
    %22 = vector.load %arg9[%21, %c64] : memref<16x96xf32, #tpu.memory_space<vmem>>, vector<16x32xf32>
    %23 = arith.truncf %22 : vector<16x32xf32> to vector<16x32xbf16>
    %cst_18 = arith.constant 0.000000e+00 : f32
    %24 = vector.broadcast %cst_18 : f32 to vector<16x32xf32>
    %25 = vector.broadcast %9 : vector<1x32xbf16> to vector<16x32xbf16>
    %26 = arith.mulf %20, %25 : vector<16x32xbf16>
    %cst_19 = arith.constant dense<0.000000e+00> : vector<16x16xf32>
    %27 = tpu.matmul %17, %26, %cst_19 {dimension_numbers = #tpu.dot_dimension_numbers<[1], [1], [0], [0], [0, 0, 1, 0], [], []>} : vector<16x32xbf16>, vector<16x32xbf16>, vector<16x16xf32> -> vector<16x16xf32>
    %28 = arith.addf %27, %8 : vector<16x16xf32>
    %cst_20 = arith.constant dense<0xFF800000> : vector<16xf32>
    %29 = vector.multi_reduction <maximumf>, %28, %cst_20 [1] : vector<16x16xf32> to vector<16xf32>
    %30 = vector.shape_cast %29 : vector<16xf32> to vector<16x1xf32>
    %31 = vector.broadcast %30 : vector<16x1xf32> to vector<16x16xf32>
    %32 = arith.subf %28, %31 : vector<16x16xf32>
    %33 = math.exp %32 : vector<16x16xf32>
    %cst_21 = arith.constant dense<0.000000e+00> : vector<16xf32>
    %34 = vector.multi_reduction <add>, %33, %cst_21 [1] : vector<16x16xf32> to vector<16xf32>
    %35 = vector.shape_cast %34 : vector<16xf32> to vector<16x1xf32>
    %36 = tpu.reciprocal %35 {approx = true} : vector<16x1xf32> -> vector<16x1xf32>
    %37 = vector.broadcast %36 : vector<16x1xf32> to vector<16x16xf32>
    %38 = arith.mulf %33, %37 : vector<16x16xf32>
    %39 = arith.truncf %38 : vector<16x16xf32> to vector<16x16xbf16>
    %40 = vector.broadcast %9 : vector<1x32xbf16> to vector<16x32xbf16>
    %41 = arith.mulf %23, %40 : vector<16x32xbf16>
    %cst_22 = arith.constant dense<0.000000e+00> : vector<16x32xf32>
    %42 = tpu.matmul %39, %41, %cst_22 {dimension_numbers = #tpu.dot_dimension_numbers<[1], [0], [0], [1], [0, 0, 1, 1], [], []>} : vector<16x16xbf16>, vector<16x32xbf16>, vector<16x32xf32> -> vector<16x32xf32>
    %43 = arith.addf %24, %42 : vector<16x32xf32>
    %44 = vector.broadcast %10 : vector<1x32xbf16> to vector<16x32xbf16>
    %45 = arith.mulf %20, %44 : vector<16x32xbf16>
    %cst_23 = arith.constant dense<0.000000e+00> : vector<16x16xf32>
    %46 = tpu.matmul %17, %45, %cst_23 {dimension_numbers = #tpu.dot_dimension_numbers<[1], [1], [0], [0], [0, 0, 1, 0], [], []>} : vector<16x32xbf16>, vector<16x32xbf16>, vector<16x16xf32> -> vector<16x16xf32>
    %47 = arith.addf %46, %8 : vector<16x16xf32>
    %cst_24 = arith.constant dense<0xFF800000> : vector<16xf32>
    %48 = vector.multi_reduction <maximumf>, %47, %cst_24 [1] : vector<16x16xf32> to vector<16xf32>
    %49 = vector.shape_cast %48 : vector<16xf32> to vector<16x1xf32>
    %50 = vector.broadcast %49 : vector<16x1xf32> to vector<16x16xf32>
    %51 = arith.subf %47, %50 : vector<16x16xf32>
    %52 = math.exp %51 : vector<16x16xf32>
    %cst_25 = arith.constant dense<0.000000e+00> : vector<16xf32>
    %53 = vector.multi_reduction <add>, %52, %cst_25 [1] : vector<16x16xf32> to vector<16xf32>
    %54 = vector.shape_cast %53 : vector<16xf32> to vector<16x1xf32>
    %55 = tpu.reciprocal %54 {approx = true} : vector<16x1xf32> -> vector<16x1xf32>
    %56 = vector.broadcast %55 : vector<16x1xf32> to vector<16x16xf32>
    %57 = arith.mulf %52, %56 : vector<16x16xf32>
    %58 = arith.truncf %57 : vector<16x16xf32> to vector<16x16xbf16>
    %59 = vector.broadcast %10 : vector<1x32xbf16> to vector<16x32xbf16>
    %60 = arith.mulf %23, %59 : vector<16x32xbf16>
    %cst_26 = arith.constant dense<0.000000e+00> : vector<16x32xf32>
    %61 = tpu.matmul %58, %60, %cst_26 {dimension_numbers = #tpu.dot_dimension_numbers<[1], [0], [0], [1], [0, 0, 1, 1], [], []>} : vector<16x16xbf16>, vector<16x32xbf16>, vector<16x32xf32> -> vector<16x32xf32>
    %62 = arith.addf %43, %61 : vector<16x32xf32>
    %63 = arith.truncf %62 : vector<16x32xf32> to vector<16x32xbf16>
    %cst_27 = arith.constant dense<0.000000e+00> : vector<16x32xf32>
    %64 = tpu.matmul %63, %11, %cst_27 {dimension_numbers = #tpu.dot_dimension_numbers<[1], [0], [0], [1], [0, 0, 1, 1], [], []>} : vector<16x32xbf16>, vector<32x32xbf16>, vector<16x32xf32> -> vector<16x32xf32>
    %65 = vector.broadcast %12 : vector<1x32xf32> to vector<16x32xf32>
    %66 = arith.addf %64, %65 : vector<16x32xf32>
    %c2_i32 = arith.constant 2 : i32
    %67 = arith.muli %c0_i32, %c2_i32 : i32
    %68 = tpu.assume_multiple %67, 2 : i32
    %69 = vector.shape_cast %66 : vector<16x32xf32> to vector<2x8x32xf32>
    %70 = arith.truncf %69 : vector<2x8x32xf32> to vector<2x8x32xbf16>
    %71 = arith.index_cast %68 : i32 to index
    %c0_28 = arith.constant 0 : index
    %c0_29 = arith.constant 0 : index
    %72 = vector.load %arg8[%71, %c0_28, %c0_29] : memref<2x8x32xbf16, #tpu.memory_space<vmem>>, vector<2x8x32xbf16>
    tpu.vector_store %arg8[%71, %c0_28, %c0_29], %70 {strides = array<i32>} : memref<2x8x32xbf16, #tpu.memory_space<vmem>>, vector<2x8x32xbf16>,
    %c1_i32 = arith.constant 1 : i32
    return
  }
  func.func @transform_0(%arg0: i32) -> (i32, i32, i32) {
    %c0_i32 = arith.constant 0 : i32
    %c0_i32_0 = arith.constant 0 : i32
    %c0_i32_1 = arith.constant 0 : i32
    return %arg0, %c0_i32, %c0_i32_0 : i32, i32, i32
  }
  func.func @transform_1(%arg0: i32) -> (i32, i32) {
    %c0_i32 = arith.constant 0 : i32
    %c0_i32_0 = arith.constant 0 : i32
    %c0_i32_1 = arith.constant 0 : i32
    return %c0_i32, %c0_i32_0 : i32, i32
  }
  func.func @transform_2(%arg0: i32) -> (i32, i32) {
    %c0_i32 = arith.constant 0 : i32
    %c0_i32_0 = arith.constant 0 : i32
    %c0_i32_1 = arith.constant 0 : i32
    return %c0_i32, %c0_i32_0 : i32, i32
  }
  func.func @transform_3(%arg0: i32) -> (i32, i32) {
    %c0_i32 = arith.constant 0 : i32
    %c0_i32_0 = arith.constant 0 : i32
    %c0_i32_1 = arith.constant 0 : i32
    return %c0_i32, %c0_i32_0 : i32, i32
  }
  func.func @transform_4(%arg0: i32) -> (i32, i32) {
    %c0_i32 = arith.constant 0 : i32
    %c0_i32_0 = arith.constant 0 : i32
    %c0_i32_1 = arith.constant 0 : i32
    return %c0_i32, %c0_i32_0 : i32, i32
  }
  func.func @transform_5(%arg0: i32) -> (i32, i32) {
    %c0_i32 = arith.constant 0 : i32
    %c0_i32_0 = arith.constant 0 : i32
    %c0_i32_1 = arith.constant 0 : i32
    return %c0_i32, %c0_i32_0 : i32, i32
  }
  func.func @transform_6(%arg0: i32) -> (i32, i32) {
    %c0_i32 = arith.constant 0 : i32
    %c0_i32_0 = arith.constant 0 : i32
    %c0_i32_1 = arith.constant 0 : i32
    return %c0_i32, %c0_i32_0 : i32, i32
  }
  func.func @transform_7(%arg0: i32) -> (i32, i32, i32) {
    %c0_i32 = arith.constant 0 : i32
    %c0_i32_0 = arith.constant 0 : i32
    %c0_i32_1 = arith.constant 0 : i32
    return %arg0, %c0_i32, %c0_i32_0 : i32, i32, i32
  }
}

module attributes {stable_mosaic.version = 11 : i64} {
  func.func @_mca_kernel(%arg0: i32, %arg1: memref<2x8x32xbf16, #tpu.memory_space<vmem>>, %arg2: memref<32x96xbf16, #tpu.memory_space<vmem>>, %arg3: memref<1x96xf32, #tpu.memory_space<vmem>>, %arg4: memref<32x32xbf16, #tpu.memory_space<vmem>>, %arg5: memref<1x32xf32, #tpu.memory_space<vmem>>, %arg6: memref<16x16xf32, #tpu.memory_space<vmem>>, %arg7: memref<2x32xbf16, #tpu.memory_space<vmem>>, %arg8: memref<2x8x32xbf16, #tpu.memory_space<vmem>>, %arg9: memref<16x96xf32, #tpu.memory_space<vmem>>) attributes {dimension_semantics = [#tpu.dimension_semantics<parallel>], iteration_bounds = array<i64: 1>, scalar_prefetch = 0 : i64, scratch_operands = 1 : i64, tpu.core_type = #tpu.core_type<tc>, window_params = [{transform_indices = @transform_0, window_bounds = array<i64: 2, 8, 32>}, {pipeline_mode = #tpu.pipeline_mode<synchronous>, transform_indices = @transform_1, window_bounds = array<i64: 32, 96>}, {pipeline_mode = #tpu.pipeline_mode<synchronous>, transform_indices = @transform_2, window_bounds = array<i64: 1, 96>}, {pipeline_mode = #tpu.pipeline_mode<synchronous>, transform_indices = @transform_3, window_bounds = array<i64: 32, 32>}, {pipeline_mode = #tpu.pipeline_mode<synchronous>, transform_indices = @transform_4, window_bounds = array<i64: 1, 32>}, {pipeline_mode = #tpu.pipeline_mode<synchronous>, transform_indices = @transform_5, window_bounds = array<i64: 16, 16>}, {pipeline_mode = #tpu.pipeline_mode<synchronous>, transform_indices = @transform_6, window_bounds = array<i64: 2, 32>}, {transform_indices = @transform_7, window_bounds = array<i64: 2, 8, 32>}]} {
    %c0 = arith.constant 0 : index
    %c0_0 = arith.constant 0 : index
    %c0_1 = arith.constant 0 : index
    %0 = vector.load %arg1[%c0, %c0_0, %c0_1] : memref<2x8x32xbf16, #tpu.memory_space<vmem>>, vector<2x8x32xbf16>
    %1 = vector.shape_cast %0 : vector<2x8x32xbf16> to vector<16x32xbf16>
    %c0_2 = arith.constant 0 : index
    %c0_3 = arith.constant 0 : index
    %2 = vector.load %arg2[%c0_2, %c0_3] : memref<32x96xbf16, #tpu.memory_space<vmem>>, vector<32x96xbf16>
    %cst = arith.constant dense<0.000000e+00> : vector<16x96xf32>
    %3 = tpu.matmul %1, %2, %cst {dimension_numbers = #tpu.dot_dimension_numbers<[1], [0], [0], [1], [0, 0, 1, 1], [], []>} : vector<16x32xbf16>, vector<32x96xbf16>, vector<16x96xf32> -> vector<16x96xf32>
    %c0_4 = arith.constant 0 : index
    %c0_5 = arith.constant 0 : index
    %4 = vector.load %arg3[%c0_4, %c0_5] : memref<1x96xf32, #tpu.memory_space<vmem>>, vector<1x96xf32>
    %5 = vector.broadcast %4 : vector<1x96xf32> to vector<16x96xf32>
    %6 = arith.addf %3, %5 : vector<16x96xf32>
    %c0_6 = arith.constant 0 : index
    %c0_7 = arith.constant 0 : index
    %7 = vector.load %arg9[%c0_6, %c0_7] : memref<16x96xf32, #tpu.memory_space<vmem>>, vector<16x96xf32>
    tpu.vector_store %arg9[%c0_6, %c0_7], %6 {strides = array<i32>} : memref<16x96xf32, #tpu.memory_space<vmem>>, vector<16x96xf32>,
    %c0_8 = arith.constant 0 : index
    %c0_9 = arith.constant 0 : index
    %8 = vector.load %arg6[%c0_8, %c0_9] : memref<16x16xf32, #tpu.memory_space<vmem>>, vector<16x16xf32>
    %c0_10 = arith.constant 0 : index
    %c0_11 = arith.constant 0 : index
    %9 = vector.load %arg7[%c0_10, %c0_11] : memref<2x32xbf16, #tpu.memory_space<vmem>>, vector<1x32xbf16>
    %c1 = arith.constant 1 : index
    %c0_12 = arith.constant 0 : index
    %10 = vector.load %arg7[%c1, %c0_12] : memref<2x32xbf16, #tpu.memory_space<vmem>>, vector<1x32xbf16>
    %c0_13 = arith.constant 0 : index
    %c0_14 = arith.constant 0 : index
    %11 = vector.load %arg4[%c0_13, %c0_14] : memref<32x32xbf16, #tpu.memory_space<vmem>>, vector<32x32xbf16>
    %c0_15 = arith.constant 0 : index
    %c0_16 = arith.constant 0 : index
    %12 = vector.load %arg5[%c0_15, %c0_16] : memref<1x32xf32, #tpu.memory_space<vmem>>, vector<1x32xf32>
    %c0_i32 = arith.constant 0 : i32
    %c16_i32 = arith.constant 16 : i32
    %13 = arith.muli %c0_i32, %c16_i32 : i32
    %14 = tpu.assume_multiple %13, 16 : i32
    %15 = arith.index_cast %14 : i32 to index
    %c0_17 = arith.constant 0 : index
    %16 = vector.load %arg9[%15, %c0_17] : memref<16x96xf32, #tpu.memory_space<vmem>>, vector<16x32xf32>
    %17 = arith.truncf %16 : vector<16x32xf32> to vector<16x32xbf16>
    %18 = arith.index_cast %14 : i32 to index
    %c32 = arith.constant 32 : index
    %19 = vector.load %arg9[%18, %c32] : memref<16x96xf32, #tpu.memory_space<vmem>>, vector<16x32xf32>
    %20 = arith.truncf %19 : vector<16x32xf32> to vector<16x32xbf16>
    %21 = arith.index_cast %14 : i32 to index
    %c64 = arith.constant 64 : index
    %22 = vector.load %arg9[%21, %c64] : memref<16x96xf32, #tpu.memory_space<vmem>>, vector<16x32xf32>
    %23 = arith.truncf %22 : vector<16x32xf32> to vector<16x32xbf16>
    %cst_18 = arith.constant 0.000000e+00 : f32
    %24 = vector.broadcast %cst_18 : f32 to vector<16x32xf32>
    %25 = vector.broadcast %9 : vector<1x32xbf16> to vector<16x32xbf16>
    %26 = arith.mulf %20, %25 : vector<16x32xbf16>
    %cst_19 = arith.constant dense<0.000000e+00> : vector<16x16xf32>
    %27 = tpu.matmul %17, %26, %cst_19 {dimension_numbers = #tpu.dot_dimension_numbers<[1], [1], [0], [0], [0, 0, 1, 0], [], []>} : vector<16x32xbf16>, vector<16x32xbf16>, vector<16x16xf32> -> vector<16x16xf32>
    %28 = arith.addf %27, %8 : vector<16x16xf32>
    %cst_20 = arith.constant dense<0xFF800000> : vector<16xf32>
    %29 = vector.multi_reduction <maximumf>, %28, %cst_20 [1] : vector<16x16xf32> to vector<16xf32>
    %30 = vector.shape_cast %29 : vector<16xf32> to vector<16x1xf32>
    %31 = vector.broadcast %30 : vector<16x1xf32> to vector<16x16xf32>
    %32 = arith.subf %28, %31 : vector<16x16xf32>
    %33 = math.exp %32 : vector<16x16xf32>
    %cst_21 = arith.constant dense<0.000000e+00> : vector<16xf32>
    %34 = vector.multi_reduction <add>, %33, %cst_21 [1] : vector<16x16xf32> to vector<16xf32>
    %35 = vector.shape_cast %34 : vector<16xf32> to vector<16x1xf32>
    %36 = tpu.reciprocal %35 {approx = true} : vector<16x1xf32> -> vector<16x1xf32>
    %37 = vector.broadcast %36 : vector<16x1xf32> to vector<16x16xf32>
    %38 = arith.mulf %33, %37 : vector<16x16xf32>
    %39 = arith.truncf %38 : vector<16x16xf32> to vector<16x16xbf16>
    %40 = vector.broadcast %9 : vector<1x32xbf16> to vector<16x32xbf16>
    %41 = arith.mulf %23, %40 : vector<16x32xbf16>
    %cst_22 = arith.constant dense<0.000000e+00> : vector<16x32xf32>
    %42 = tpu.matmul %39, %41, %cst_22 {dimension_numbers = #tpu.dot_dimension_numbers<[1], [0], [0], [1], [0, 0, 1, 1], [], []>} : vector<16x16xbf16>, vector<16x32xbf16>, vector<16x32xf32> -> vector<16x32xf32>
    %43 = arith.addf %24, %42 : vector<16x32xf32>
    %44 = vector.broadcast %10 : vector<1x32xbf16> to vector<16x32xbf16>
    %45 = arith.mulf %20, %44 : vector<16x32xbf16>
    %cst_23 = arith.constant dense<0.000000e+00> : vector<16x16xf32>
    %46 = tpu.matmul %17, %45, %cst_23 {dimension_numbers = #tpu.dot_dimension_numbers<[1], [1], [0], [0], [0, 0, 1, 0], [], []>} : vector<16x32xbf16>, vector<16x32xbf16>, vector<16x16xf32> -> vector<16x16xf32>
    %47 = arith.addf %46, %8 : vector<16x16xf32>
    %cst_24 = arith.constant dense<0xFF800000> : vector<16xf32>
    %48 = vector.multi_reduction <maximumf>, %47, %cst_24 [1] : vector<16x16xf32> to vector<16xf32>
    %49 = vector.shape_cast %48 : vector<16xf32> to vector<16x1xf32>
    %50 = vector.broadcast %49 : vector<16x1xf32> to vector<16x16xf32>
    %51 = arith.subf %47, %50 : vector<16x16xf32>
    %52 = math.exp %51 : vector<16x16xf32>
    %cst_25 = arith.constant dense<0.000000e+00> : vector<16xf32>
    %53 = vector.multi_reduction <add>, %52, %cst_25 [1] : vector<16x16xf32> to vector<16xf32>
    %54 = vector.shape_cast %53 : vector<16xf32> to vector<16x1xf32>
    %55 = tpu.reciprocal %54 {approx = true} : vector<16x1xf32> -> vector<16x1xf32>
    %56 = vector.broadcast %55 : vector<16x1xf32> to vector<16x16xf32>
    %57 = arith.mulf %52, %56 : vector<16x16xf32>
    %58 = arith.truncf %57 : vector<16x16xf32> to vector<16x16xbf16>
    %59 = vector.broadcast %10 : vector<1x32xbf16> to vector<16x32xbf16>
    %60 = arith.mulf %23, %59 : vector<16x32xbf16>
    %cst_26 = arith.constant dense<0.000000e+00> : vector<16x32xf32>
    %61 = tpu.matmul %58, %60, %cst_26 {dimension_numbers = #tpu.dot_dimension_numbers<[1], [0], [0], [1], [0, 0, 1, 1], [], []>} : vector<16x16xbf16>, vector<16x32xbf16>, vector<16x32xf32> -> vector<16x32xf32>
    %62 = arith.addf %43, %61 : vector<16x32xf32>
    %63 = arith.truncf %62 : vector<16x32xf32> to vector<16x32xbf16>
    %cst_27 = arith.constant dense<0.000000e+00> : vector<16x32xf32>
    %64 = tpu.matmul %63, %11, %cst_27 {dimension_numbers = #tpu.dot_dimension_numbers<[1], [0], [0], [1], [0, 0, 1, 1], [], []>} : vector<16x32xbf16>, vector<32x32xbf16>, vector<16x32xf32> -> vector<16x32xf32>
    %65 = vector.broadcast %12 : vector<1x32xf32> to vector<16x32xf32>
    %66 = arith.addf %64, %65 : vector<16x32xf32>
    %c2_i32 = arith.constant 2 : i32
    %67 = arith.muli %c0_i32, %c2_i32 : i32
    %68 = tpu.assume_multiple %67, 2 : i32
    %69 = vector.shape_cast %66 : vector<16x32xf32> to vector<2x8x32xf32>
    %70 = arith.truncf %69 : vector<2x8x32xf32> to vector<2x8x32xbf16>
    %71 = arith.index_cast %68 : i32 to index
    %c0_28 = arith.constant 0 : index
    %c0_29 = arith.constant 0 : index
    %72 = vector.load %arg8[%71, %c0_28, %c0_29] : memref<2x8x32xbf16, #tpu.memory_space<vmem>>, vector<2x8x32xbf16>
    tpu.vector_store %arg8[%71, %c0_28, %c0_29], %70 {strides = array<i32>} : memref<2x8x32xbf16, #tpu.memory_space<vmem>>, vector<2x8x32xbf16>,
    %c1_i32 = arith.constant 1 : i32
    return
  }
  func.func @transform_0(%arg0: i32) -> (i32, i32, i32) {
    %c0_i32 = arith.constant 0 : i32
    %c0_i32_0 = arith.constant 0 : i32
    %c0_i32_1 = arith.constant 0 : i32
    return %arg0, %c0_i32, %c0_i32_0 : i32, i32, i32
  }
  func.func @transform_1(%arg0: i32) -> (i32, i32) {
    %c0_i32 = arith.constant 0 : i32
    %c0_i32_0 = arith.constant 0 : i32
    %c0_i32_1 = arith.constant 0 : i32
    return %c0_i32, %c0_i32_0 : i32, i32
  }
  func.func @transform_2(%arg0: i32) -> (i32, i32) {
    %c0_i32 = arith.constant 0 : i32
    %c0_i32_0 = arith.constant 0 : i32
    %c0_i32_1 = arith.constant 0 : i32
    return %c0_i32, %c0_i32_0 : i32, i32
  }
  func.func @transform_3(%arg0: i32) -> (i32, i32) {
    %c0_i32 = arith.constant 0 : i32
    %c0_i32_0 = arith.constant 0 : i32
    %c0_i32_1 = arith.constant 0 : i32
    return %c0_i32, %c0_i32_0 : i32, i32
  }
  func.func @transform_4(%arg0: i32) -> (i32, i32) {
    %c0_i32 = arith.constant 0 : i32
    %c0_i32_0 = arith.constant 0 : i32
    %c0_i32_1 = arith.constant 0 : i32
    return %c0_i32, %c0_i32_0 : i32, i32
  }
  func.func @transform_5(%arg0: i32) -> (i32, i32) {
    %c0_i32 = arith.constant 0 : i32
    %c0_i32_0 = arith.constant 0 : i32
    %c0_i32_1 = arith.constant 0 : i32
    return %c0_i32, %c0_i32_0 : i32, i32
  }
  func.func @transform_6(%arg0: i32) -> (i32, i32) {
    %c0_i32 = arith.constant 0 : i32
    %c0_i32_0 = arith.constant 0 : i32
    %c0_i32_1 = arith.constant 0 : i32
    return %c0_i32, %c0_i32_0 : i32, i32
  }
  func.func @transform_7(%arg0: i32) -> (i32, i32, i32) {
    %c0_i32 = arith.constant 0 : i32
    %c0_i32_0 = arith.constant 0 : i32
    %c0_i32_1 = arith.constant 0 : i32
    return %arg0, %c0_i32, %c0_i32_0 : i32, i32, i32
  }
}

</mosaic_0001>

<bundles_post_ra>
// kernel: tpu_custom_call.1
= control target key start
LH: loop header
LB: loop body
LE: loop exit
PB: predicated region body
PF: predicated region fallthrough
CT: control target
= control target key end

     0   :  { %12 = vsyncpa [#allocation4], 0  ;;  %s688_s0 = inlined_call_operand.hbm [shape: bf16[2,8,32], index: 0, kind: input, shape index: {}]   ;;  %s689_s1 = inlined_call_operand.hbm [shape: bf16[32,96], index: 1, kind: input, shape index: {}]   ;;  %s690_s2 = inlined_call_operand.vmem [shape: f32[1,96], index: 2, kind: input, shape index: {}]   ;;  %s691_s3 = inlined_call_operand.hbm [shape: bf16[32,32], index: 3, kind: input, shape index: {}]   ;;  %s692_s4 = inlined_call_operand.vmem [shape: f32[1,32], index: 4, kind: input, shape index: {}]   ;;  %s693_s5 = inlined_call_operand.hbm [shape: f32[16,16], index: 5, kind: input, shape index: {}]   ;;  %s694_s6 = inlined_call_operand.vmem [shape: bf16[2,32], index: 6, kind: input, shape index: {}]   ;;  %s695_s7 = inlined_call_operand.hbm [shape: bf16[2,8,32], index: 7, kind: output, shape index: {}]  }
   0x1   :  { %13 = vsyncpa [#allocation7], 0 }
   0x2   :  { %14 = vsyncpa [#allocation10], 0 }
   0x3   :  { %15 = vsyncpa [#allocation5], 0  ;;  %s33_s26 = sshll.u32 %s689_s1, 4  ;;  %s569_s27 = smov [#allocation6]   ;;  %s34_s26 = int_to_ptr.hbm [resolvable:$true] %s33_s26 }
   0x4   :  { %s35_s28 = sshll.u32 %s569_s27, 4  ;;  %s20_s8 = sshll.u32 %s688_s0, 4  ;;  %s36_s28 = int_to_ptr.vmem [resolvable:$true] %s35_s28  ;;  %s21_s8 = int_to_ptr.hbm [resolvable:$true] %s20_s8 }
   0x5   :  { %s570_s9 = smov 64   ;;  %s571_s10 = smov 4  }
   0x6   :  { %41 = dma.hbm_to_vmem [thread:$0]  %s34_s26, 256, %s36_s28, [#allocation7], %s570_s9, %s570_s9, %s571_s10  }
   0x7   :  { %s572_s11 = smov [#allocation3]   ;;  %s48_s1 = sshll.u32 %s691_s3, 4  ;;  %s49_s1 = int_to_ptr.hbm [resolvable:$true] %s48_s1 }
   0x8   :  { %s22_s12 = sshll.u32 %s572_s11, 4  ;;  %s63_s16 = sshll.u32 %s693_s5, 4  ;;  %s23_s12 = int_to_ptr.vmem [resolvable:$true] %s22_s12  ;;  %s64_s16 = int_to_ptr.hbm [resolvable:$true] %s63_s16 }
   0x9   :  { %28 = dma.hbm_to_vmem [thread:$0]  %s21_s8, 128, %s23_s12, [#allocation4], %s570_s9, %s570_s9, %s571_s10  }
   0xa   :  { %s573_s17 = smov [#allocation8]   ;;  %s574_s19 = smov [#allocation9]  }
   0xb   :  { %s50_s18 = sshll.u32 %s573_s17, 4  ;;  %s65_s3 = sshll.u32 %s574_s19, 4  ;;  %s51_s18 = int_to_ptr.vmem [resolvable:$true] %s50_s18  ;;  %s66_s3 = int_to_ptr.vmem [resolvable:$true] %s65_s3 }
   0xc   :  { %56 = dma.hbm_to_vmem [thread:$0]  %s49_s1, 256, %s51_s18, [#allocation7], %s570_s9, %s570_s9, %s571_s10  }
   0xd   :  { %s575_s20 = smov 128   ;;  %s576_s21 = smov 8  }
   0xe   :  { %71 = dma.hbm_to_vmem [thread:$0]  %s64_s16, 256, %s66_s3, [#allocation10], %s575_s20, %s575_s20, %s576_s21  }
   0xf   :  { %561 = dma.done.wait [#allocation4], 128  }
  0x10   :  { %562 = vsyncadd [#allocation4], 4294967168 }
  0x11   :  { %563 = dma.done.wait [#allocation7], 512  }
  0x12   :  { %564 = vsyncadd [#allocation7], 4294966784 }
  0x13   :  { %565 = dma.done.wait [#allocation10], 256  }
  0x14   :  { %566 = vsyncadd [#allocation10], 4294967040  ;;  %v409_v0 = vld [vmem:[#allocation6 + $0x8] sm:$0xff]  ;;  %v408_v2 = vld [vmem:[#allocation6] sm:$0xff]  ;;  %vm118_vm0 = vcmask 261120   ;;  %s577_s23 = smov 32  }
  0x15   :  { %v141_v1 = vld [vmem:[%s694_s6] sm:$0x1]  ;;  %128 = vmatpush.bf16.msra.mxu0 %v409_v0  ;;  %v407_v5 = vld [vmem:[#allocation3] sm:$0xff]  ;;  %vm136_vm1 = vcmask 785408   ;;  %v139_v35 = vld [vmem:[#allocation9] sm:$0xff]  ;;  %vm189_vm2 = vcmask 130048  }
  0x16   :  { %v219_v3 = vshrl.u32 %v141_v1, 16  ;;  %v153_v7 = vpack.i.b16 %v141_v1, %v141_v1  ;;  %v423_v11 = vld [vmem:[%s690_s2] ss:$0 sm:$0xff]  ;;  %s578_s2 = smov 96   ;;  %vm357_vm3 = vcmask 257024   ;;  %s579_s27 = smov [#allocation11]  }
  0x17   :  { %v140_v42 = vld [vmem:[#allocation9 + $0x8] sm:$0xff]  ;;  %s364_s28 = sshll.u32 %s579_s27, 4  ;;  %s366_s8 = sshll.u32 %s695_s7, 4  ;;  %s365_s28 = int_to_ptr.vmem [resolvable:$true] %s364_s28  ;;  %s367_s8 = int_to_ptr.hbm [resolvable:$true] %s366_s8 }
  0x18   :  { %v220_v4 = vpack.i.b16 %v219_v3, %v219_v3  ;;  %v155_v9 = vperm.slane %v153_v7, 0 }
  0x19   :  { %129 = vmatpush.bf16.msra.mxu0 %v408_v2 }
  0x1a   :  { %v222_v6 = vperm.slane %v220_v4, 0  ;;  %v158_v10 = vunpack.c.l.bf16 %v155_v9 }
  0x1c   :  { %v223_v8 = vunpack.c.l.bf16 %v222_v6  ;;  %393 = vmatmul.msk.bf16.vlgmr.msra.gmra.mxu0 %vm118_vm0, %v407_v5 }
  0x1e   :  { %225 = vrot.lane.b32.xlu0 %v223_v8, %s577_s23 }
  0x26   :  { %160 = vrot.lane.b32.xlu0 %v158_v10, %s577_s23 }
  0x90   :  { %v226_v18 = vpop.permute.xlu0 %225 }
  0x98   :  { %v161_v27 = vpop.permute.xlu0 %160 }
  0x99   :  { %v131_v12 = vpop.f32.mrf.mxu0 }
  0x9a   :  { %v132_v13 = vadd.f32 %v423_v11, %v131_v12 }
  0x9c   :  { %137 = vst.msk [vmem:[#allocation2] sm:$0xff] %vm136_vm1, %v132_v13 }
  0xa1   :  { %v133_v14 = vpop.f32.mrf.mxu0 }
  0xa2   :  { %v134_v15 = vadd.f32 %v423_v11, %v133_v14 }
  0xa3   :  { %v147_v16 = vld [vmem:[#allocation2] sm:$0xff] }
  0xa4   :  { %138 = vst.msk [vmem:[#allocation2 + $0x8] sm:$0xff] %vm136_vm1, %v134_v15  ;;  %v150_v17 = vpack.c.bf16 %v147_v16, %v147_v16 }
  0xa6   :  { %v648_v20 = vunpack.c.l.bf16 %v150_v17 }
  0xa8   :  { %v228_v24 = vmul.f32 %v226_v18, %v648_v20  ;;  %v163_v29 = vmul.f32 %v161_v27, %v648_v20 }
  0xab   :  { %v148_v19 = vld [vmem:[#allocation2 + $0x8] sm:$0xff] }
  0xac   :  { %v151_v21 = vpack.c.bf16 %v148_v19, %v148_v19  ;;  %v149_v22 = vpack.c.bf16 %v148_v19, %v147_v16 }
  0xae   :  { %v650_v23 = vunpack.c.l.bf16 %v151_v21 }
  0xb0   :  { %v229_v25 = vmul.f32 %v226_v18, %v650_v23  ;;  %v164_v28 = vmul.f32 %v161_v27, %v650_v23 }
  0xb2   :  { %v230_v26 = vpack.c.bf16 %v229_v25, %v228_v24  ;;  %v165_v30 = vpack.c.bf16 %v164_v28, %v163_v29  ;;  %v411_v29 = vld [vmem:[#allocation8 + $0x8] sm:$0xff] }
  0xb3   :  { %347 = vmatpush.bf16.msrb.mxu0 %v411_v29 }
  0xb4   :  { %232 = vrot.lane.b32.xlu1 %v230_v26, %s578_s2 }
  0xbc   :  { %167 = vrot.lane.b32.xlu1 %v165_v30, %s578_s2  ;;  %v410_v30 = vld [vmem:[#allocation8] sm:$0xff] }
  0xbd   :  { %348 = vmatpush.bf16.msrb.mxu0 %v410_v30 }
 0x126   :  { %v233_v31 = vpop.permute.xlu1 %232 }
 0x127   :  { %v235_v32 = vsel %vm118_vm0, %v233_v31, 0 }
 0x128   :  { %244 = vmatpush.bf16.xpose.msra.mxu2 %v235_v32 }
 0x12e   :  { %v168_v33 = vpop.permute.xlu1 %167 }
 0x12f   :  { %395 = vmatmul.msk.bf16.vlgmr.msra.gmra.mxu2 %vm118_vm0, %v149_v22  ;;  %v173_v34 = vsel %vm118_vm0, %v168_v33, 0 }
 0x130   :  { %182 = vmatpush.bf16.xpose.msra.mxu1 %v173_v34 }
 0x137   :  { %394 = vmatmul.msk.bf16.vlgmr.msra.gmra.mxu1 %vm118_vm0, %v149_v22 }
 0x1b2   :  { %v246_v36 = vpop.f32.mrf.mxu2 }
 0x1b3   :  { %v247_v37 = vadd.f32 %v246_v36, %v139_v35 }
 0x1b4   :  { %v184_v38 = vpop.f32.mrf.mxu1 }
 0x1b5   :  { %v185_v39 = vadd.f32 %v184_v38, %v139_v35  ;;  %v251_v40 = vsel %vm189_vm2, %v247_v37, -inf  ;;  %v424_v38 = vld [vmem:[%s692_s4] ss:$0 sm:$0xff] }
 0x1b6   :  { %252 = vmax.xlane.f32.xlu2 %v251_v40 }
 0x1b7   :  { %v190_v41 = vsel %vm189_vm2, %v185_v39, -inf }
 0x1b8   :  { %191 = vmax.xlane.f32.xlu0 %v190_v41 }
 0x1ba   :  { %v248_v46 = vpop.f32.mrf.mxu2 }
 0x1bb   :  { %v249_v47 = vadd.f32 %v248_v46, %v140_v42 }
 0x1bc   :  { %v186_v43 = vpop.f32.mrf.mxu1 }
 0x1bd   :  { %v187_v44 = vadd.f32 %v186_v43, %v140_v42  ;;  %v254_v48 = vsel %vm189_vm2, %v249_v47, -inf }
 0x1bf   :  { %v193_v45 = vsel %vm189_vm2, %v187_v44, -inf }
 0x1c0   :  { %194 = vmax.xlane.f32.xlu1 %v193_v45 }
 0x1ce   :  { %274 = vrot.lane.b32.xlu2 %v223_v8, %s570_s9 }
 0x1f7   :  { %255 = vmax.xlane.f32.xlu2 %v254_v48 }
 0x20f   :  { %213 = vrot.lane.b32.xlu2 %v158_v10, %s570_s9 }
 0x229   :  { %v253_v49 = vpop.xlane.xlu2 %252 }
 0x22a   :  { %v257_v50 = vsub.f32 %v247_v37, %v253_v49 }
 0x22b   :  { %v192_v51 = vpop.xlane.xlu0 %191 }
 0x22c   :  { %v259_v52 = vmul.f32 1.442695, %v257_v50  ;;  %v196_v53 = vsub.f32 %v185_v39, %v192_v51 }
 0x22e   :  { %425 = vpow2.f32 %v259_v52  ;;  %v198_v54 = vmul.f32 1.442695, %v196_v53 }
 0x230   :  { %427 = vpow2.f32 %v198_v54 }
 0x231   :  { %v275_v55 = vpop.permute.xlu2 %274 }
 0x232   :  { %v277_v56 = vmul.f32 %v275_v55, %v648_v20  ;;  %v278_v57 = vmul.f32 %v275_v55, %v650_v23 }
 0x233   :  { %v195_v58 = vpop.xlane.xlu1 %194 }
 0x234   :  { %v426_v59 = vpop.eup %425  ;;  %v197_v60 = vsub.f32 %v187_v44, %v195_v58  ;;  %v279_v61 = vpack.c.bf16 %v278_v57, %v277_v56 }
 0x235   :  { %v263_v0 = vsel %vm189_vm2, %v426_v59, 0.0 }
 0x236   :  { %v428_v62 = vpop.eup %427  ;;  %v200_v63 = vmul.f32 1.442695, %v197_v60  ;;  %281 = vrot.lane.b32.xlu1 %v279_v61, %s570_s9 }
 0x237   :  { %v202_v1 = vsel %vm189_vm2, %v428_v62, 0.0 }
 0x238   :  { %429 = vpow2.f32 %v200_v63  ;;  %264 = vadd.xlane.f32.xlu2 %v263_v0  ;;  %203 = vadd.xlane.f32.xlu0 %v202_v1 }
 0x23e   :  { %v430_v2 = vpop.eup %429 }
 0x23f   :  { %v205_v3 = vsel %vm189_vm2, %v430_v2, 0.0 }
 0x240   :  { %206 = vadd.xlane.f32.xlu0 %v205_v3 }
 0x26a   :  { %v256_v4 = vpop.xlane.xlu2 %255 }
 0x26b   :  { %v258_v5 = vsub.f32 %v249_v47, %v256_v4 }
 0x26d   :  { %v261_v6 = vmul.f32 1.442695, %v258_v5 }
 0x26f   :  { %431 = vpow2.f32 %v261_v6 }
 0x272   :  { %v214_v9 = vpop.permute.xlu2 %213 }
 0x273   :  { %v216_v10 = vmul.f32 %v214_v9, %v648_v20  ;;  %v217_v11 = vmul.f32 %v214_v9, %v650_v23 }
 0x275   :  { %v432_v7 = vpop.eup %431  ;;  %v218_v12 = vpack.c.bf16 %v217_v11, %v216_v10 }
 0x276   :  { %v266_v8 = vsel %vm189_vm2, %v432_v7, 0.0 }
 0x277   :  { %267 = vadd.xlane.f32.xlu0 %v266_v8 }
 0x28b   :  { %302 = vrot.lane.b32.xlu0 %v218_v12, %s570_s9 }
 0x2a8   :  { %v282_v13 = vpop.permute.xlu1 %281 }
 0x2a9   :  { %294 = vmatpush.bf16.msra.mxu3 %v282_v13 }
 0x2ab   :  { %v204_v14 = vpop.xlane.xlu0 %203  ;;  %v265_v16 = vpop.xlane.xlu2 %264 }
 0x2ac   :  { %433 = vrcp.f32 %v265_v16 }
 0x2b2   :  { %v434_v18 = vpop.eup %433 }
 0x2b3   :  { %v207_v15 = vpop.xlane.xlu0 %206  ;;  %v271_v21 = vmul.f32 %v434_v18, %v426_v59 }
 0x2ea   :  { %v268_v17 = vpop.xlane.xlu0 %267 }
 0x2eb   :  { %435 = vrcp.f32 %v268_v17 }
 0x2ec   :  { %437 = vrcp.f32 %v207_v15 }
 0x2ed   :  { %439 = vrcp.f32 %v204_v14 }
 0x2f1   :  { %v436_v19 = vpop.eup %435 }
 0x2f2   :  { %v272_v22 = vmul.f32 %v436_v19, %v432_v7  ;;  %v438_v20 = vpop.eup %437 }
 0x2f3   :  { %v440_v25 = vpop.eup %439  ;;  %v211_v26 = vmul.f32 %v438_v20, %v430_v2 }
 0x2f4   :  { %v273_v24 = vpack.c.bf16 %v272_v22, %v271_v21  ;;  %v210_v27 = vmul.f32 %v440_v25, %v428_v62 }
 0x2f6   :  { %396 = vmatmul.msk.bf16.vlgmr.msra.gmra.mxu3 %vm189_vm2, %v273_v24  ;;  %v212_v28 = vpack.c.bf16 %v211_v26, %v210_v27 }
 0x2fd   :  { %v303_v23 = vpop.permute.xlu0 %302 }
 0x2fe   :  { %315 = vmatpush.bf16.msrb.mxu3 %v303_v23 }
 0x306   :  { %397 = vmatmul.msk.bf16.vlgmr.msrb.gmra.mxu3 %vm189_vm2, %v212_v28 }
 0x379   :  { %v296_v31 = vpop.f32.mrf.mxu3 }
 0x381   :  { %v298_v32 = vpop.f32.mrf.mxu3 }
 0x389   :  { %v317_v33 = vpop.f32.mrf.mxu3 }
 0x38a   :  { %v318_v35 = vadd.f32 %v317_v33, %v296_v31 }
 0x391   :  { %v319_v34 = vpop.f32.mrf.mxu3 }
 0x392   :  { %v320_v36 = vadd.f32 %v319_v34, %v298_v32 }
 0x394   :  { %v322_v37 = vpack.c.bf16 %v320_v36, %v318_v35 }
 0x396   :  { %406 = vmatmul.msk.bf16.vlgmr.msrb.gmra.mxu0 %vm118_vm0, %v322_v37 }
 0x413   :  { %v350_v39 = vpop.f32.mrf.mxu0 }
 0x414   :  { %v351_v40 = vadd.f32 %v424_v38, %v350_v39 }
 0x416   :  { %v355_v41 = vpack.c.bf16 %v351_v40, %v351_v40 }
 0x418   :  { %358 = vst.msk [vmem:[#allocation11] sm:$0xf] %vm357_vm3, %v355_v41 }
 0x41b   :  { %v352_v42 = vpop.f32.mrf.mxu0 }
 0x41c   :  { %v353_v43 = vadd.f32 %v424_v38, %v352_v42 }
 0x41e   :  { %v356_v44 = vpack.c.bf16 %v353_v43, %v353_v43 }
 0x420   :  { %359 = vst.msk [vmem:[#allocation11 + $0x4] sm:$0xf] %vm357_vm3, %v356_v44 }
 0x421   :  { %372 = dma.vmem_to_hbm [thread:$0]  %s365_s28, 128, %s367_s8, [#allocation5], %s570_s9, %s570_s9, %s571_s10  }
 0x422   :  { %567 = dma.done.wait [#allocation5], 128  }
 0x423   :  { %568 = vsyncadd [#allocation5], 4294967168 }
 0x424   :  { %377 = vsyncpa [#allocation4], 1 }
 0x425   :  { %378 = vsyncpa [#allocation7], 1 }
 0x426   :  { %379 = vsyncpa [#allocation10], 1 }
 0x427   :  { %380 = vsyncpa [#allocation5], 1 }

// kernel: tpu_custom_call.1
= control target key start
LH: loop header
LB: loop body
LE: loop exit
PB: predicated region body
PF: predicated region fallthrough
CT: control target
= control target key end

     0   :  { %12 = vsyncpa [#allocation4], 0  ;;  %s688_s0 = inlined_call_operand.hbm [shape: bf16[2,8,32], index: 0, kind: input, shape index: {}]   ;;  %s689_s1 = inlined_call_operand.hbm [shape: bf16[32,96], index: 1, kind: input, shape index: {}]   ;;  %s690_s2 = inlined_call_operand.vmem [shape: f32[1,96], index: 2, kind: input, shape index: {}]   ;;  %s691_s3 = inlined_call_operand.hbm [shape: bf16[32,32], index: 3, kind: input, shape index: {}]   ;;  %s692_s4 = inlined_call_operand.vmem [shape: f32[1,32], index: 4, kind: input, shape index: {}]   ;;  %s693_s5 = inlined_call_operand.hbm [shape: f32[16,16], index: 5, kind: input, shape index: {}]   ;;  %s694_s6 = inlined_call_operand.vmem [shape: bf16[2,32], index: 6, kind: input, shape index: {}]   ;;  %s695_s7 = inlined_call_operand.hbm [shape: bf16[2,8,32], index: 7, kind: output, shape index: {}]  }
   0x1   :  { %13 = vsyncpa [#allocation7], 0 }
   0x2   :  { %14 = vsyncpa [#allocation10], 0 }
   0x3   :  { %15 = vsyncpa [#allocation5], 0  ;;  %s33_s26 = sshll.u32 %s689_s1, 4  ;;  %s569_s27 = smov [#allocation6]   ;;  %s34_s26 = int_to_ptr.hbm [resolvable:$true] %s33_s26 }
   0x4   :  { %s35_s28 = sshll.u32 %s569_s27, 4  ;;  %s20_s8 = sshll.u32 %s688_s0, 4  ;;  %s36_s28 = int_to_ptr.vmem [resolvable:$true] %s35_s28  ;;  %s21_s8 = int_to_ptr.hbm [resolvable:$true] %s20_s8 }
   0x5   :  { %s570_s9 = smov 64   ;;  %s571_s10 = smov 4  }
   0x6   :  { %41 = dma.hbm_to_vmem [thread:$0]  %s34_s26, 256, %s36_s28, [#allocation7], %s570_s9, %s570_s9, %s571_s10  }
   0x7   :  { %s572_s11 = smov [#allocation3]   ;;  %s48_s1 = sshll.u32 %s691_s3, 4  ;;  %s49_s1 = int_to_ptr.hbm [resolvable:$true] %s48_s1 }
   0x8   :  { %s22_s12 = sshll.u32 %s572_s11, 4  ;;  %s63_s16 = sshll.u32 %s693_s5, 4  ;;  %s23_s12 = int_to_ptr.vmem [resolvable:$true] %s22_s12  ;;  %s64_s16 = int_to_ptr.hbm [resolvable:$true] %s63_s16 }
   0x9   :  { %28 = dma.hbm_to_vmem [thread:$0]  %s21_s8, 128, %s23_s12, [#allocation4], %s570_s9, %s570_s9, %s571_s10  }
   0xa   :  { %s573_s17 = smov [#allocation8]   ;;  %s574_s19 = smov [#allocation9]  }
   0xb   :  { %s50_s18 = sshll.u32 %s573_s17, 4  ;;  %s65_s3 = sshll.u32 %s574_s19, 4  ;;  %s51_s18 = int_to_ptr.vmem [resolvable:$true] %s50_s18  ;;  %s66_s3 = int_to_ptr.vmem [resolvable:$true] %s65_s3 }
   0xc   :  { %56 = dma.hbm_to_vmem [thread:$0]  %s49_s1, 256, %s51_s18, [#allocation7], %s570_s9, %s570_s9, %s571_s10  }
   0xd   :  { %s575_s20 = smov 128   ;;  %s576_s21 = smov 8  }
   0xe   :  { %71 = dma.hbm_to_vmem [thread:$0]  %s64_s16, 256, %s66_s3, [#allocation10], %s575_s20, %s575_s20, %s576_s21  }
   0xf   :  { %561 = dma.done.wait [#allocation4], 128  }
  0x10   :  { %562 = vsyncadd [#allocation4], 4294967168 }
  0x11   :  { %563 = dma.done.wait [#allocation7], 512  }
  0x12   :  { %564 = vsyncadd [#allocation7], 4294966784 }
  0x13   :  { %565 = dma.done.wait [#allocation10], 256  }
  0x14   :  { %566 = vsyncadd [#allocation10], 4294967040  ;;  %v409_v0 = vld [vmem:[#allocation6 + $0x8] sm:$0xff]  ;;  %v408_v2 = vld [vmem:[#allocation6] sm:$0xff]  ;;  %vm118_vm0 = vcmask 261120   ;;  %s577_s23 = smov 32  }
  0x15   :  { %v141_v1 = vld [vmem:[%s694_s6] sm:$0x1]  ;;  %128 = vmatpush.bf16.msra.mxu0 %v409_v0  ;;  %v407_v5 = vld [vmem:[#allocation3] sm:$0xff]  ;;  %vm136_vm1 = vcmask 785408   ;;  %v139_v35 = vld [vmem:[#allocation9] sm:$0xff]  ;;  %vm189_vm2 = vcmask 130048  }
  0x16   :  { %v219_v3 = vshrl.u32 %v141_v1, 16  ;;  %v153_v7 = vpack.i.b16 %v141_v1, %v141_v1  ;;  %v423_v11 = vld [vmem:[%s690_s2] ss:$0 sm:$0xff]  ;;  %s578_s2 = smov 96   ;;  %vm357_vm3 = vcmask 257024   ;;  %s579_s27 = smov [#allocation11]  }
  0x17   :  { %v140_v42 = vld [vmem:[#allocation9 + $0x8] sm:$0xff]  ;;  %s364_s28 = sshll.u32 %s579_s27, 4  ;;  %s366_s8 = sshll.u32 %s695_s7, 4  ;;  %s365_s28 = int_to_ptr.vmem [resolvable:$true] %s364_s28  ;;  %s367_s8 = int_to_ptr.hbm [resolvable:$true] %s366_s8 }
  0x18   :  { %v220_v4 = vpack.i.b16 %v219_v3, %v219_v3  ;;  %v155_v9 = vperm.slane %v153_v7, 0 }
  0x19   :  { %129 = vmatpush.bf16.msra.mxu0 %v408_v2 }
  0x1a   :  { %v222_v6 = vperm.slane %v220_v4, 0  ;;  %v158_v10 = vunpack.c.l.bf16 %v155_v9 }
  0x1c   :  { %v223_v8 = vunpack.c.l.bf16 %v222_v6  ;;  %393 = vmatmul.msk.bf16.vlgmr.msra.gmra.mxu0 %vm118_vm0, %v407_v5 }
  0x1e   :  { %225 = vrot.lane.b32.xlu0 %v223_v8, %s577_s23 }
  0x26   :  { %160 = vrot.lane.b32.xlu0 %v158_v10, %s577_s23 }
  0x90   :  { %v226_v18 = vpop.permute.xlu0 %225 }
  0x98   :  { %v161_v27 = vpop.permute.xlu0 %160 }
  0x99   :  { %v131_v12 = vpop.f32.mrf.mxu0 }
  0x9a   :  { %v132_v13 = vadd.f32 %v423_v11, %v131_v12 }
  0x9c   :  { %137 = vst.msk [vmem:[#allocation2] sm:$0xff] %vm136_vm1, %v132_v13 }
  0xa1   :  { %v133_v14 = vpop.f32.mrf.mxu0 }
  0xa2   :  { %v134_v15 = vadd.f32 %v423_v11, %v133_v14 }
  0xa3   :  { %v147_v16 = vld [vmem:[#allocation2] sm:$0xff] }
  0xa4   :  { %138 = vst.msk [vmem:[#allocation2 + $0x8] sm:$0xff] %vm136_vm1, %v134_v15  ;;  %v150_v17 = vpack.c.bf16 %v147_v16, %v147_v16 }
  0xa6   :  { %v648_v20 = vunpack.c.l.bf16 %v150_v17 }
  0xa8   :  { %v228_v24 = vmul.f32 %v226_v18, %v648_v20  ;;  %v163_v29 = vmul.f32 %v161_v27, %v648_v20 }
  0xab   :  { %v148_v19 = vld [vmem:[#allocation2 + $0x8] sm:$0xff] }
  0xac   :  { %v151_v21 = vpack.c.bf16 %v148_v19, %v148_v19  ;;  %v149_v22 = vpack.c.bf16 %v148_v19, %v147_v16 }
  0xae   :  { %v650_v23 = vunpack.c.l.bf16 %v151_v21 }
  0xb0   :  { %v229_v25 = vmul.f32 %v226_v18, %v650_v23  ;;  %v164_v28 = vmul.f32 %v161_v27, %v650_v23 }
  0xb2   :  { %v230_v26 = vpack.c.bf16 %v229_v25, %v228_v24  ;;  %v165_v30 = vpack.c.bf16 %v164_v28, %v163_v29  ;;  %v411_v29 = vld [vmem:[#allocation8 + $0x8] sm:$0xff] }
  0xb3   :  { %347 = vmatpush.bf16.msrb.mxu0 %v411_v29 }
  0xb4   :  { %232 = vrot.lane.b32.xlu1 %v230_v26, %s578_s2 }
  0xbc   :  { %167 = vrot.lane.b32.xlu1 %v165_v30, %s578_s2  ;;  %v410_v30 = vld [vmem:[#allocation8] sm:$0xff] }
  0xbd   :  { %348 = vmatpush.bf16.msrb.mxu0 %v410_v30 }
 0x126   :  { %v233_v31 = vpop.permute.xlu1 %232 }
 0x127   :  { %v235_v32 = vsel %vm118_vm0, %v233_v31, 0 }
 0x128   :  { %244 = vmatpush.bf16.xpose.msra.mxu2 %v235_v32 }
 0x12e   :  { %v168_v33 = vpop.permute.xlu1 %167 }
 0x12f   :  { %395 = vmatmul.msk.bf16.vlgmr.msra.gmra.mxu2 %vm118_vm0, %v149_v22  ;;  %v173_v34 = vsel %vm118_vm0, %v168_v33, 0 }
 0x130   :  { %182 = vmatpush.bf16.xpose.msra.mxu1 %v173_v34 }
 0x137   :  { %394 = vmatmul.msk.bf16.vlgmr.msra.gmra.mxu1 %vm118_vm0, %v149_v22 }
 0x1b2   :  { %v246_v36 = vpop.f32.mrf.mxu2 }
 0x1b3   :  { %v247_v37 = vadd.f32 %v246_v36, %v139_v35 }
 0x1b4   :  { %v184_v38 = vpop.f32.mrf.mxu1 }
 0x1b5   :  { %v185_v39 = vadd.f32 %v184_v38, %v139_v35  ;;  %v251_v40 = vsel %vm189_vm2, %v247_v37, -inf  ;;  %v424_v38 = vld [vmem:[%s692_s4] ss:$0 sm:$0xff] }
 0x1b6   :  { %252 = vmax.xlane.f32.xlu2 %v251_v40 }
 0x1b7   :  { %v190_v41 = vsel %vm189_vm2, %v185_v39, -inf }
 0x1b8   :  { %191 = vmax.xlane.f32.xlu0 %v190_v41 }
 0x1ba   :  { %v248_v46 = vpop.f32.mrf.mxu2 }
 0x1bb   :  { %v249_v47 = vadd.f32 %v248_v46, %v140_v42 }
 0x1bc   :  { %v186_v43 = vpop.f32.mrf.mxu1 }
 0x1bd   :  { %v187_v44 = vadd.f32 %v186_v43, %v140_v42  ;;  %v254_v48 = vsel %vm189_vm2, %v249_v47, -inf }
 0x1bf   :  { %v193_v45 = vsel %vm189_vm2, %v187_v44, -inf }
 0x1c0   :  { %194 = vmax.xlane.f32.xlu1 %v193_v45 }
 0x1ce   :  { %274 = vrot.lane.b32.xlu2 %v223_v8, %s570_s9 }
 0x1f7   :  { %255 = vmax.xlane.f32.xlu2 %v254_v48 }
 0x20f   :  { %213 = vrot.lane.b32.xlu2 %v158_v10, %s570_s9 }
 0x229   :  { %v253_v49 = vpop.xlane.xlu2 %252 }
 0x22a   :  { %v257_v50 = vsub.f32 %v247_v37, %v253_v49 }
 0x22b   :  { %v192_v51 = vpop.xlane.xlu0 %191 }
 0x22c   :  { %v259_v52 = vmul.f32 1.442695, %v257_v50  ;;  %v196_v53 = vsub.f32 %v185_v39, %v192_v51 }
 0x22e   :  { %425 = vpow2.f32 %v259_v52  ;;  %v198_v54 = vmul.f32 1.442695, %v196_v53 }
 0x230   :  { %427 = vpow2.f32 %v198_v54 }
 0x231   :  { %v275_v55 = vpop.permute.xlu2 %274 }
 0x232   :  { %v277_v56 = vmul.f32 %v275_v55, %v648_v20  ;;  %v278_v57 = vmul.f32 %v275_v55, %v650_v23 }
 0x233   :  { %v195_v58 = vpop.xlane.xlu1 %194 }
 0x234   :  { %v426_v59 = vpop.eup %425  ;;  %v197_v60 = vsub.f32 %v187_v44, %v195_v58  ;;  %v279_v61 = vpack.c.bf16 %v278_v57, %v277_v56 }
 0x235   :  { %v263_v0 = vsel %vm189_vm2, %v426_v59, 0.0 }
 0x236   :  { %v428_v62 = vpop.eup %427  ;;  %v200_v63 = vmul.f32 1.442695, %v197_v60  ;;  %281 = vrot.lane.b32.xlu1 %v279_v61, %s570_s9 }
 0x237   :  { %v202_v1 = vsel %vm189_vm2, %v428_v62, 0.0 }
 0x238   :  { %429 = vpow2.f32 %v200_v63  ;;  %264 = vadd.xlane.f32.xlu2 %v263_v0  ;;  %203 = vadd.xlane.f32.xlu0 %v202_v1 }
 0x23e   :  { %v430_v2 = vpop.eup %429 }
 0x23f   :  { %v205_v3 = vsel %vm189_vm2, %v430_v2, 0.0 }
 0x240   :  { %206 = vadd.xlane.f32.xlu0 %v205_v3 }
 0x26a   :  { %v256_v4 = vpop.xlane.xlu2 %255 }
 0x26b   :  { %v258_v5 = vsub.f32 %v249_v47, %v256_v4 }
 0x26d   :  { %v261_v6 = vmul.f32 1.442695, %v258_v5 }
 0x26f   :  { %431 = vpow2.f32 %v261_v6 }
 0x272   :  { %v214_v9 = vpop.permute.xlu2 %213 }
 0x273   :  { %v216_v10 = vmul.f32 %v214_v9, %v648_v20  ;;  %v217_v11 = vmul.f32 %v214_v9, %v650_v23 }
 0x275   :  { %v432_v7 = vpop.eup %431  ;;  %v218_v12 = vpack.c.bf16 %v217_v11, %v216_v10 }
 0x276   :  { %v266_v8 = vsel %vm189_vm2, %v432_v7, 0.0 }
 0x277   :  { %267 = vadd.xlane.f32.xlu0 %v266_v8 }
 0x28b   :  { %302 = vrot.lane.b32.xlu0 %v218_v12, %s570_s9 }
 0x2a8   :  { %v282_v13 = vpop.permute.xlu1 %281 }
 0x2a9   :  { %294 = vmatpush.bf16.msra.mxu3 %v282_v13 }
 0x2ab   :  { %v204_v14 = vpop.xlane.xlu0 %203  ;;  %v265_v16 = vpop.xlane.xlu2 %264 }
 0x2ac   :  { %433 = vrcp.f32 %v265_v16 }
 0x2b2   :  { %v434_v18 = vpop.eup %433 }
 0x2b3   :  { %v207_v15 = vpop.xlane.xlu0 %206  ;;  %v271_v21 = vmul.f32 %v434_v18, %v426_v59 }
 0x2ea   :  { %v268_v17 = vpop.xlane.xlu0 %267 }
 0x2eb   :  { %435 = vrcp.f32 %v268_v17 }
 0x2ec   :  { %437 = vrcp.f32 %v207_v15 }
 0x2ed   :  { %439 = vrcp.f32 %v204_v14 }
 0x2f1   :  { %v436_v19 = vpop.eup %435 }
 0x2f2   :  { %v272_v22 = vmul.f32 %v436_v19, %v432_v7  ;;  %v438_v20 = vpop.eup %437 }
 0x2f3   :  { %v440_v25 = vpop.eup %439  ;;  %v211_v26 = vmul.f32 %v438_v20, %v430_v2 }
 0x2f4   :  { %v273_v24 = vpack.c.bf16 %v272_v22, %v271_v21  ;;  %v210_v27 = vmul.f32 %v440_v25, %v428_v62 }
 0x2f6   :  { %396 = vmatmul.msk.bf16.vlgmr.msra.gmra.mxu3 %vm189_vm2, %v273_v24  ;;  %v212_v28 = vpack.c.bf16 %v211_v26, %v210_v27 }
 0x2fd   :  { %v303_v23 = vpop.permute.xlu0 %302 }
 0x2fe   :  { %315 = vmatpush.bf16.msrb.mxu3 %v303_v23 }
 0x306   :  { %397 = vmatmul.msk.bf16.vlgmr.msrb.gmra.mxu3 %vm189_vm2, %v212_v28 }
 0x379   :  { %v296_v31 = vpop.f32.mrf.mxu3 }
 0x381   :  { %v298_v32 = vpop.f32.mrf.mxu3 }
 0x389   :  { %v317_v33 = vpop.f32.mrf.mxu3 }
 0x38a   :  { %v318_v35 = vadd.f32 %v317_v33, %v296_v31 }
 0x391   :  { %v319_v34 = vpop.f32.mrf.mxu3 }
 0x392   :  { %v320_v36 = vadd.f32 %v319_v34, %v298_v32 }
 0x394   :  { %v322_v37 = vpack.c.bf16 %v320_v36, %v318_v35 }
 0x396   :  { %406 = vmatmul.msk.bf16.vlgmr.msrb.gmra.mxu0 %vm118_vm0, %v322_v37 }
 0x413   :  { %v350_v39 = vpop.f32.mrf.mxu0 }
 0x414   :  { %v351_v40 = vadd.f32 %v424_v38, %v350_v39 }
 0x416   :  { %v355_v41 = vpack.c.bf16 %v351_v40, %v351_v40 }
 0x418   :  { %358 = vst.msk [vmem:[#allocation11] sm:$0xf] %vm357_vm3, %v355_v41 }
 0x41b   :  { %v352_v42 = vpop.f32.mrf.mxu0 }
 0x41c   :  { %v353_v43 = vadd.f32 %v424_v38, %v352_v42 }
 0x41e   :  { %v356_v44 = vpack.c.bf16 %v353_v43, %v353_v43 }
 0x420   :  { %359 = vst.msk [vmem:[#allocation11 + $0x4] sm:$0xf] %vm357_vm3, %v356_v44 }
 0x421   :  { %372 = dma.vmem_to_hbm [thread:$0]  %s365_s28, 128, %s367_s8, [#allocation5], %s570_s9, %s570_s9, %s571_s10  }
 0x422   :  { %567 = dma.done.wait [#allocation5], 128  }
 0x423   :  { %568 = vsyncadd [#allocation5], 4294967168 }
 0x424   :  { %377 = vsyncpa [#allocation4], 1 }
 0x425   :  { %378 = vsyncpa [#allocation7], 1 }
 0x426   :  { %379 = vsyncpa [#allocation10], 1 }
 0x427   :  { %380 = vsyncpa [#allocation5], 1 }

</bundles_post_ra>
